<compile_context>
chip_gen: v5e
topology: v5e:2x2
jax: 0.10.0
libtpu: 0.0.40
codegen_flags: <defaults>
</compile_context>

<pallas_src>
import jax
import jax.numpy as jnp
from jax.experimental import pallas as pl
from jax.experimental.pallas import tpu as pltpu


def _make_conv_relu_kernel(KH, KW, Wp, C_in, C_out, S_out):
    """Build a kernel closed over the static conv geometry.

    Refs per grid step (one image):
      x_ref : (1, C_in, S_in)       zero-padded image, spatial flattened (h*Wp + w)
      w_ref : (KH*KW, C_out, C_in)  per-tap weight matrices
      b_ref : (C_out, 1)            bias
      o_ref : (1, C_out, S_out)     output, S_out = Ho*Wp (lane-dense)
    """
    taps = [(kh, kw) for kh in range(KH) for kw in range(KW)]

    def kernel(x_ref, w_ref, b_ref, o_ref):
        x_im = x_ref[0]                                   # (C_in, S_in), loaded once
        acc = jnp.zeros((C_out, S_out), jnp.float32)
        for t, (kh, kw) in enumerate(taps):
            d = kh * Wp + kw                              # static tap offset
            xs = x_im[:, d:d + S_out]                     # (C_in, S_out) shifted view
            acc = acc + jnp.dot(w_ref[t], xs,
                                preferred_element_type=jnp.float32)
        acc = acc + b_ref[...]                            # (C_out, 1) broadcasts over lanes
        o_ref[0] = jnp.maximum(acc, 0.0).astype(o_ref.dtype)

    return kernel


def conv_relu(x_nchw, weight, bias, *, stride=1, padding=1):
    """Pallas Conv2d + ReLU, matching nn.Conv2d(..., stride=1, padding=padding) + ReLU.

    x_nchw : (N, C_in, H, W)        float32 (PyTorch layout)
    weight : (C_out, C_in, KH, KW)  float32 (PyTorch layout)
    bias   : (C_out,)               float32
    returns: (N, C_out, H_out, W_out) float32 (NCHW)
    """
    assert stride == 1, "only stride=1 implemented (module default)"
    N, C_in, H, W = x_nchw.shape
    C_out, C_in_w, KH, KW = weight.shape
    assert C_in_w == C_in

    Hp, Wp = H + 2 * padding, W + 2 * padding
    Ho, Wo = Hp - KH + 1, Wp - KW + 1
    assert Wp >= KW - 1

    # Single wrapper pass over the activation: spatial zero-pad (plus one extra
    # zero row at the bottom so the last taps' flattened reads stay in bounds;
    # those positions only feed the discarded garbage columns).
    x_pad = jnp.pad(x_nchw, ((0, 0), (0, 0),
                             (padding, padding + 1), (padding, padding)))
    S_in = (Hp + 1) * Wp
    S_out = Ho * Wp
    x_flat = x_pad.reshape(N, C_in, S_in)                  # contiguous, free reshape

    # Tiny weight/bias rearrangement: w_r[t, co, ci] = weight[co, ci, kh, kw], t = kh*KW+kw.
    w_r = jnp.transpose(weight, (2, 3, 0, 1)).reshape(KH * KW, C_out, C_in)
    b_r = bias.reshape(C_out, 1)

    kernel = _make_conv_relu_kernel(KH, KW, Wp, C_in, C_out, S_out)

    out_flat = pl.pallas_call(
        kernel,
        out_shape=jax.ShapeDtypeStruct((N, C_out, S_out), x_nchw.dtype),
        grid_spec=pltpu.PrefetchScalarGridSpec(
            num_scalar_prefetch=0,
            grid=(N,),
            in_specs=[
                pl.BlockSpec((1, C_in, S_in), lambda n: (n, 0, 0)),
                pl.BlockSpec((KH * KW, C_out, C_in), lambda n: (0, 0, 0)),
                pl.BlockSpec((C_out, 1), lambda n: (0, 0)),
            ],
            out_specs=pl.BlockSpec((1, C_out, S_out), lambda n: (n, 0, 0)),
        ),
        compiler_params=pltpu.CompilerParams(dimension_semantics=("parallel",)),
    )(x_flat, w_r, b_r)

    # Drop the KW-1 wrapped columns per output row; result is already NCHW.
    out = out_flat.reshape(N, C_out, Ho, Wp)[:, :, :, :Wo]
    return out


if __name__ == "__main__":
    # Small shapes consistent with the module: CONV(in_channels=4, out_channels=8)
    N, C_in, H, W = 2, 4, 16, 16
    C_out, KH, KW = 8, 3, 3

    key = jax.random.PRNGKey(0)
    kx, kw, kb = jax.random.split(key, 3)
    x = jax.random.normal(kx, (N, C_in, H, W), dtype=jnp.float32)
    # Deterministic synthetic parameters matching nn.Conv2d(4, 8, 3) shapes.
    weight = jax.random.normal(kw, (C_out, C_in, KH, KW), dtype=jnp.float32) * 0.1
    bias = jax.random.normal(kb, (C_out,), dtype=jnp.float32) * 0.1

    out = jax.block_until_ready(conv_relu(x, weight, bias, stride=1, padding=1))

    # Pure-JAX reference check (same semantics as nn.Conv2d + ReLU).
    ref = jax.lax.conv_general_dilated(
        x, weight, window_strides=(1, 1), padding=((1, 1), (1, 1)),
        dimension_numbers=("NCHW", "OIHW", "NCHW"))
    ref = jnp.maximum(ref + bias[None, :, None, None], 0.0)
    assert out.shape == (N, C_out, H, W)
    assert jnp.allclose(out, ref, atol=1e-4, rtol=1e-4)

    print("KERNEL_OK")
</pallas_src>

<mosaic_0001>
module attributes {stable_mosaic.version = 11 : i64} {
  func.func @kernel(%arg0: i32, %arg1: memref<1x4x342xf32, #tpu.memory_space<vmem>>, %arg2: memref<9x8x4xf32, #tpu.memory_space<vmem>>, %arg3: memref<8x1xf32, #tpu.memory_space<vmem>>, %arg4: memref<1x8x288xf32, #tpu.memory_space<vmem>>) attributes {dimension_semantics = [#tpu.dimension_semantics<parallel>], iteration_bounds = array<i64: 2>, scalar_prefetch = 0 : i64, scratch_operands = 0 : i64, tpu.core_type = #tpu.core_type<tc>, window_params = [{transform_indices = @transform_0, window_bounds = array<i64: 1, 4, 342>}, {pipeline_mode = #tpu.pipeline_mode<synchronous>, transform_indices = @transform_1, window_bounds = array<i64: 9, 8, 4>}, {pipeline_mode = #tpu.pipeline_mode<synchronous>, transform_indices = @transform_2, window_bounds = array<i64: 8, 1>}, {transform_indices = @transform_3, window_bounds = array<i64: 1, 8, 288>}]} {
    %c0 = arith.constant 0 : index
    %c0_0 = arith.constant 0 : index
    %c0_1 = arith.constant 0 : index
    %0 = vector.load %arg1[%c0, %c0_0, %c0_1] : memref<1x4x342xf32, #tpu.memory_space<vmem>>, vector<1x4x342xf32>
    %1 = vector.shape_cast %0 : vector<1x4x342xf32> to vector<4x342xf32>
    %cst = arith.constant 0.000000e+00 : f32
    %2 = vector.broadcast %cst : f32 to vector<8x288xf32>
    %3 = vector.extract_strided_slice %1 {offsets = [0, 0], sizes = [4, 288], strides = [1, 1]} : vector<4x342xf32> to vector<4x288xf32>
    %c0_2 = arith.constant 0 : index
    %c0_3 = arith.constant 0 : index
    %c0_4 = arith.constant 0 : index
    %4 = vector.load %arg2[%c0_2, %c0_3, %c0_4] : memref<9x8x4xf32, #tpu.memory_space<vmem>>, vector<1x8x4xf32>
    %5 = vector.shape_cast %4 : vector<1x8x4xf32> to vector<8x4xf32>
    %cst_5 = arith.constant dense<0.000000e+00> : vector<8x288xf32>
    %6 = tpu.matmul %5, %3, %cst_5 {dimension_numbers = #tpu.dot_dimension_numbers<[1], [0], [0], [1], [0, 0, 1, 1], [], []>} : vector<8x4xf32>, vector<4x288xf32>, vector<8x288xf32> -> vector<8x288xf32>
    %7 = arith.addf %2, %6 : vector<8x288xf32>
    %8 = vector.extract_strided_slice %1 {offsets = [0, 1], sizes = [4, 288], strides = [1, 1]} : vector<4x342xf32> to vector<4x288xf32>
    %c1 = arith.constant 1 : index
    %c0_6 = arith.constant 0 : index
    %c0_7 = arith.constant 0 : index
    %9 = vector.load %arg2[%c1, %c0_6, %c0_7] : memref<9x8x4xf32, #tpu.memory_space<vmem>>, vector<1x8x4xf32>
    %10 = vector.shape_cast %9 : vector<1x8x4xf32> to vector<8x4xf32>
    %cst_8 = arith.constant dense<0.000000e+00> : vector<8x288xf32>
    %11 = tpu.matmul %10, %8, %cst_8 {dimension_numbers = #tpu.dot_dimension_numbers<[1], [0], [0], [1], [0, 0, 1, 1], [], []>} : vector<8x4xf32>, vector<4x288xf32>, vector<8x288xf32> -> vector<8x288xf32>
    %12 = arith.addf %7, %11 : vector<8x288xf32>
    %13 = vector.extract_strided_slice %1 {offsets = [0, 2], sizes = [4, 288], strides = [1, 1]} : vector<4x342xf32> to vector<4x288xf32>
    %c2 = arith.constant 2 : index
    %c0_9 = arith.constant 0 : index
    %c0_10 = arith.constant 0 : index
    %14 = vector.load %arg2[%c2, %c0_9, %c0_10] : memref<9x8x4xf32, #tpu.memory_space<vmem>>, vector<1x8x4xf32>
    %15 = vector.shape_cast %14 : vector<1x8x4xf32> to vector<8x4xf32>
    %cst_11 = arith.constant dense<0.000000e+00> : vector<8x288xf32>
    %16 = tpu.matmul %15, %13, %cst_11 {dimension_numbers = #tpu.dot_dimension_numbers<[1], [0], [0], [1], [0, 0, 1, 1], [], []>} : vector<8x4xf32>, vector<4x288xf32>, vector<8x288xf32> -> vector<8x288xf32>
    %17 = arith.addf %12, %16 : vector<8x288xf32>
    %18 = vector.extract_strided_slice %1 {offsets = [0, 18], sizes = [4, 288], strides = [1, 1]} : vector<4x342xf32> to vector<4x288xf32>
    %c3 = arith.constant 3 : index
    %c0_12 = arith.constant 0 : index
    %c0_13 = arith.constant 0 : index
    %19 = vector.load %arg2[%c3, %c0_12, %c0_13] : memref<9x8x4xf32, #tpu.memory_space<vmem>>, vector<1x8x4xf32>
    %20 = vector.shape_cast %19 : vector<1x8x4xf32> to vector<8x4xf32>
    %cst_14 = arith.constant dense<0.000000e+00> : vector<8x288xf32>
    %21 = tpu.matmul %20, %18, %cst_14 {dimension_numbers = #tpu.dot_dimension_numbers<[1], [0], [0], [1], [0, 0, 1, 1], [], []>} : vector<8x4xf32>, vector<4x288xf32>, vector<8x288xf32> -> vector<8x288xf32>
    %22 = arith.addf %17, %21 : vector<8x288xf32>
    %23 = vector.extract_strided_slice %1 {offsets = [0, 19], sizes = [4, 288], strides = [1, 1]} : vector<4x342xf32> to vector<4x288xf32>
    %c4 = arith.constant 4 : index
    %c0_15 = arith.constant 0 : index
    %c0_16 = arith.constant 0 : index
    %24 = vector.load %arg2[%c4, %c0_15, %c0_16] : memref<9x8x4xf32, #tpu.memory_space<vmem>>, vector<1x8x4xf32>
    %25 = vector.shape_cast %24 : vector<1x8x4xf32> to vector<8x4xf32>
    %cst_17 = arith.constant dense<0.000000e+00> : vector<8x288xf32>
    %26 = tpu.matmul %25, %23, %cst_17 {dimension_numbers = #tpu.dot_dimension_numbers<[1], [0], [0], [1], [0, 0, 1, 1], [], []>} : vector<8x4xf32>, vector<4x288xf32>, vector<8x288xf32> -> vector<8x288xf32>
    %27 = arith.addf %22, %26 : vector<8x288xf32>
    %28 = vector.extract_strided_slice %1 {offsets = [0, 20], sizes = [4, 288], strides = [1, 1]} : vector<4x342xf32> to vector<4x288xf32>
    %c5 = arith.constant 5 : index
    %c0_18 = arith.constant 0 : index
    %c0_19 = arith.constant 0 : index
    %29 = vector.load %arg2[%c5, %c0_18, %c0_19] : memref<9x8x4xf32, #tpu.memory_space<vmem>>, vector<1x8x4xf32>
    %30 = vector.shape_cast %29 : vector<1x8x4xf32> to vector<8x4xf32>
    %cst_20 = arith.constant dense<0.000000e+00> : vector<8x288xf32>
    %31 = tpu.matmul %30, %28, %cst_20 {dimension_numbers = #tpu.dot_dimension_numbers<[1], [0], [0], [1], [0, 0, 1, 1], [], []>} : vector<8x4xf32>, vector<4x288xf32>, vector<8x288xf32> -> vector<8x288xf32>
    %32 = arith.addf %27, %31 : vector<8x288xf32>
    %33 = vector.extract_strided_slice %1 {offsets = [0, 36], sizes = [4, 288], strides = [1, 1]} : vector<4x342xf32> to vector<4x288xf32>
    %c6 = arith.constant 6 : index
    %c0_21 = arith.constant 0 : index
    %c0_22 = arith.constant 0 : index
    %34 = vector.load %arg2[%c6, %c0_21, %c0_22] : memref<9x8x4xf32, #tpu.memory_space<vmem>>, vector<1x8x4xf32>
    %35 = vector.shape_cast %34 : vector<1x8x4xf32> to vector<8x4xf32>
    %cst_23 = arith.constant dense<0.000000e+00> : vector<8x288xf32>
    %36 = tpu.matmul %35, %33, %cst_23 {dimension_numbers = #tpu.dot_dimension_numbers<[1], [0], [0], [1], [0, 0, 1, 1], [], []>} : vector<8x4xf32>, vector<4x288xf32>, vector<8x288xf32> -> vector<8x288xf32>
    %37 = arith.addf %32, %36 : vector<8x288xf32>
    %38 = vector.extract_strided_slice %1 {offsets = [0, 37], sizes = [4, 288], strides = [1, 1]} : vector<4x342xf32> to vector<4x288xf32>
    %c7 = arith.constant 7 : index
    %c0_24 = arith.constant 0 : index
    %c0_25 = arith.constant 0 : index
    %39 = vector.load %arg2[%c7, %c0_24, %c0_25] : memref<9x8x4xf32, #tpu.memory_space<vmem>>, vector<1x8x4xf32>
    %40 = vector.shape_cast %39 : vector<1x8x4xf32> to vector<8x4xf32>
    %cst_26 = arith.constant dense<0.000000e+00> : vector<8x288xf32>
    %41 = tpu.matmul %40, %38, %cst_26 {dimension_numbers = #tpu.dot_dimension_numbers<[1], [0], [0], [1], [0, 0, 1, 1], [], []>} : vector<8x4xf32>, vector<4x288xf32>, vector<8x288xf32> -> vector<8x288xf32>
    %42 = arith.addf %37, %41 : vector<8x288xf32>
    %43 = vector.extract_strided_slice %1 {offsets = [0, 38], sizes = [4, 288], strides = [1, 1]} : vector<4x342xf32> to vector<4x288xf32>
    %c8 = arith.constant 8 : index
    %c0_27 = arith.constant 0 : index
    %c0_28 = arith.constant 0 : index
    %44 = vector.load %arg2[%c8, %c0_27, %c0_28] : memref<9x8x4xf32, #tpu.memory_space<vmem>>, vector<1x8x4xf32>
    %45 = vector.shape_cast %44 : vector<1x8x4xf32> to vector<8x4xf32>
    %cst_29 = arith.constant dense<0.000000e+00> : vector<8x288xf32>
    %46 = tpu.matmul %45, %43, %cst_29 {dimension_numbers = #tpu.dot_dimension_numbers<[1], [0], [0], [1], [0, 0, 1, 1], [], []>} : vector<8x4xf32>, vector<4x288xf32>, vector<8x288xf32> -> vector<8x288xf32>
    %47 = arith.addf %42, %46 : vector<8x288xf32>
    %c0_30 = arith.constant 0 : index
    %c0_31 = arith.constant 0 : index
    %48 = vector.load %arg3[%c0_30, %c0_31] : memref<8x1xf32, #tpu.memory_space<vmem>>, vector<8x1xf32>
    %49 = vector.broadcast %48 : vector<8x1xf32> to vector<8x288xf32>
    %50 = arith.addf %47, %49 : vector<8x288xf32>
    %cst_32 = arith.constant 0.000000e+00 : f32
    %51 = vector.broadcast %cst_32 : f32 to vector<8x288xf32>
    %52 = arith.maximumf %50, %51 : vector<8x288xf32>
    %c0_33 = arith.constant 0 : index
    %c0_34 = arith.constant 0 : index
    %c0_35 = arith.constant 0 : index
    %53 = vector.load %arg4[%c0_33, %c0_34, %c0_35] : memref<1x8x288xf32, #tpu.memory_space<vmem>>, vector<1x8x288xf32>
    %54 = vector.shape_cast %53 : vector<1x8x288xf32> to vector<8x288xf32>
    %55 = vector.shape_cast %52 : vector<8x288xf32> to vector<1x8x288xf32>
    tpu.vector_store %arg4[%c0_33, %c0_34, %c0_35], %55 {strides = array<i32>} : memref<1x8x288xf32, #tpu.memory_space<vmem>>, vector<1x8x288xf32>,
    return
  }
  func.func @transform_0(%arg0: i32) -> (i32, i32, i32) {
    %c0_i32 = arith.constant 0 : i32
    %c0_i32_0 = arith.constant 0 : i32
    %c0_i32_1 = arith.constant 0 : i32
    return %arg0, %c0_i32, %c0_i32_0 : i32, i32, i32
  }
  func.func @transform_1(%arg0: i32) -> (i32, i32, i32) {
    %c0_i32 = arith.constant 0 : i32
    %c0_i32_0 = arith.constant 0 : i32
    %c0_i32_1 = arith.constant 0 : i32
    %c0_i32_2 = arith.constant 0 : i32
    return %c0_i32, %c0_i32_0, %c0_i32_1 : i32, i32, i32
  }
  func.func @transform_2(%arg0: i32) -> (i32, i32) {
    %c0_i32 = arith.constant 0 : i32
    %c0_i32_0 = arith.constant 0 : i32
    %c0_i32_1 = arith.constant 0 : i32
    return %c0_i32, %c0_i32_0 : i32, i32
  }
  func.func @transform_3(%arg0: i32) -> (i32, i32, i32) {
    %c0_i32 = arith.constant 0 : i32
    %c0_i32_0 = arith.constant 0 : i32
    %c0_i32_1 = arith.constant 0 : i32
    return %arg0, %c0_i32, %c0_i32_0 : i32, i32, i32
  }
}

</mosaic_0001>

<bundles_post_ra>
// kernel: tpu_custom_call.1
= control target key start
LH: loop header
LB: loop body
LE: loop exit
PB: predicated region body
PF: predicated region fallthrough
CT: control target
= control target key end

     0   :  { %8 = vsyncpa [#allocation3], 0  ;;  %s1464_s0 = inlined_call_operand.vmem [shape: f32[2,4,342], index: 0, kind: input, shape index: {}]   ;;  %s1465_s1 = inlined_call_operand.vmem [shape: f32[9,8,4], index: 1, kind: input, shape index: {}]   ;;  %s1466_s2 = inlined_call_operand.vmem [shape: f32[8,1], index: 2, kind: input, shape index: {}]   ;;  %s1467_s3 = inlined_call_operand.hbm [shape: f32[2,8,288], index: 3, kind: output, shape index: {}]  }
   0x1   :  { %10 = vsyncpa [#allocation3 + $0x1], 0  ;;  %s1267_s12 = smov 0   ;;  %s1269_s13 = smov 0  }
   0x2   :  { %s1271_s14 = smov 0   ;;  %s1273_s15 = smov 0  }
   0x3 LB: > { %s1288_s16 = sadd.s32 4294967295, %s1236_s15   ;;  %s1052_s17 = sadd.s32 4294967294, %s1236_s15   ;;  %s1236_s15 = sphi %s1273_s15, %s1473_s15   ;;  %s1232_s14 = sphi %s1271_s14, %s1472_s14   ;;  %s1228_s13 = sphi %s1269_s13, %s1471_s13   ;;  %s1224_s12 = sphi %s1267_s12, %s1470_s12  }
   0x4   : > { %s1292_s18 = sadd.s32 1, %s1236_s15   ;;  %s91_s19 = sadd.s32 1, %s1232_s14 }
   0x5   : > { %s88_s20 = ssub.s32 %s1236_s15, %s1292_s18  ;;  %p101_p0 = scmp.ne.s32.totalorder %s1232_s14, %s1228_s13 }
   0x6   : > { %p89_p1 = scmp.eq.s32.totalorder %s88_s20, 0  ;;  %p102_p2 = scmp.eq.s32.totalorder %s1288_s16, 1 }
   0x7   : > { %p107_p3 = scmp.ne.s32.totalorder %s1228_s13, %s1224_s12  ;;  %p108_p4 = scmp.eq.s32.totalorder %s1052_s17, 1 }
   0x8   : > { %s1303_s21 = scalar_select %p89_p1, %s1232_s14, %s91_s19  }
   0x9   : > { %p1305_p5 = por %p102_p2, %p101_p0  ;;  %p1309_p6 = por %p108_p4, %p107_p3 }
   0xa   : > { %p1055_p7 = scmp.ge.s32.totalorder %s1236_s15, 1  ;;  %p140_p8 = scmp.lt.s32.totalorder %s1236_s15, 3 }
   0xc   : > { %p141_p9 = pnand %p1055_p7, %p140_p8 }
   0xd   : > { %p164_p10 = scmp.lt.s32.totalorder (!%p141_p9), %s1288_s16, 1  ;;  %s1238_s29 = smov (!%p141_p9), 127  }
   0xe   : > { %144 = sbr.rel (%p141_p9) target bundleno = 358 (0x166), region = 32  ;;  %s1239_s30 = smov (!%p141_p9), 126  }
   0xf   : > { %s1240_s4 = smov (!%p141_p9), 110   ;;  %s1241_s5 = smov (!%p141_p9), 109  }
  0x10   : > { %s1242_s6 = smov (!%p141_p9), 108   ;;  %s1243_s7 = smov (!%p141_p9), 92  }
  0x11   : > { %s1244_s8 = smov (!%p141_p9), 91   ;;  %s1245_s9 = smov (!%p141_p9), 90  }
  0x12   : > { %s161_s17 = sand.u32 (!%p141_p9), 1, %s1228_s13   ;;  %s1124_s20 = smul.u32 (!%p141_p9), 24, %s1288_s16 }
  0x13   : > { %s165_s24 = scalar_select %p164_p10, %s1288_s16, 1  ;;  %vm195_vm0 = vcmask 1043456   ;;  %vm191_vm1 = vcmask 31744   ;;  %v171_v29 = vld [vmem:[%s1465_s1] sm:$0xff]  ;;  %vm188_vm2 = vcmask 1039360   ;;  %v1057_v31 = vld [vmem:[%s1465_s1 + $0x8] sm:$0xff] }
  0x14   : > { %vm351_vm3 = vcmask 1031168   ;;  %v1070_v36 = vld [vmem:[%s1465_s1 + $0x10] sm:$0xff]  ;;  %vm440_vm4 = vcmask 900096   ;;  %v1077_v46 = vld [vmem:[%s1465_s1 + $0x18] sm:$0xff]  ;;  %vm529_vm5 = vcmask 891904   ;;  %v1084_v52 = vld [vmem:[%s1465_s1 + $0x20] sm:$0xff]  ;;  %s988_s26 = scalar_lea.hbm %s1467_s3, %s1124_s20 }
  0x15   : > { %s1123_s25 = smul.u32 12, %s165_s24  ;;  %v960_v55 = vld [vmem:[%s1466_s2] sm:$0xff]  ;;  %v1246_v56 = vmov 0   ;;  %vm618_vm6 = vcmask 883712   ;;  %v1091_v59 = vld [vmem:[%s1465_s1 + $0x28] sm:$0xff]  ;;  %vm707_vm7 = vcmask 752640  }
  0x16   : > { %1173 = vset.pattern.permute.xlu0 %v1246_v56  ;;  %vm796_vm8 = vcmask 744448   ;;  %vm885_vm9 = vcmask 736256   ;;  %s1122_s19 = smul.u32 24, %s161_s17  ;;  %s992_s16 = sshll.u32 %s988_s26, 4  ;;  %vm974_vm10 = vcmask 261120   ;;  %s993_s16 = int_to_ptr.hbm [resolvable:$true] %s992_s16 }
  0x17   : > { %s168_s28 = scalar_lea.vmem %s1464_s0, %s1123_s25 }
  0x18   : > { %v170_v0 = vld [vmem:[%s168_s28 + $0x8] sm:$0xf]  ;;  %v1320_v1 = vld [vmem:[%s168_s28] sm:$0xff]  ;;  %s163_s27 = scalar_lea.vmem [#allocation2], %s1122_s19 }
  0x19   : > { %178 = vst [vmem:[#allocation1 + $0x10] ss:$2 sm:$0xff] %v170_v0  ;;  %s990_s28 = sshll.u32 %s163_s27, 4  ;;  %s991_s28 = int_to_ptr.vmem [resolvable:$true] %s990_s28 }
  0x1a   : > { %176 = vst [vmem:[#allocation1] ss:$2 sm:$0xff] %v1320_v1 }
  0x20   : > { %v181_v2 = vld.sshfl [vmem:[#allocation1 + $0x10] sm:$0xff pattern:$0x75316420] }
  0x21   : > { %186 = vrot.lane.b32.xlu0 %v181_v2, %s1238_s29  ;;  %264 = vst [vmem:[#allocation1 + $0x10] ss:$2 sm:$0xff] %v170_v0  ;;  %v180_v3 = vld.sshfl [vmem:[#allocation1 + $0x8] sm:$0xff pattern:$0x75316420] }
  0x22   : > { %184 = vrot.lane.b32.xlu1 %v180_v3, %s1238_s29  ;;  %v179_v4 = vld.sshfl [vmem:[#allocation1] sm:$0xff pattern:$0x75316420]  ;;  %v1098_v3 = vld [vmem:[%s1465_s1 + $0x30] sm:$0xff] }
  0x23   : > { %262 = vst [vmem:[#allocation1] ss:$2 sm:$0xff] %v1320_v1 }
  0x28   : > { %v1324_v5 = vld.sshfl [vmem:[#allocation1 + $0x10] sm:$0xff pattern:$0x75316420] }
  0x29   : > { %182 = vrot.lane.b32.xlu0 %v179_v4, %s1238_s29  ;;  %341 = vst [vmem:[#allocation1 + $0x10] ss:$2 sm:$0xff] %v170_v0  ;;  %s977_s29 = scalar_lea.sflag [#allocation3], %s161_s17 }
  0x2a   : > { %v1326_v6 = vld.sshfl [vmem:[#allocation1] sm:$0xff pattern:$0x75316420]  ;;  %v1328_v7 = vld.sshfl [vmem:[#allocation1 + $0x8] sm:$0xff pattern:$0x75316420] }
  0x2b   : > { %339 = vst [vmem:[#allocation1] ss:$2 sm:$0xff] %v1320_v1  ;;  %1064 = vmatpush.msk.msra.mxu3 %vm195_vm0, %v1326_v6 }
  0x2c   : > { %1065 = vmatmul.msk.f32.vlgmr.msra.gmra.mxu3 %vm191_vm1, %v171_v29 }
  0x30   : > { %v344_v8 = vld.sshfl [vmem:[#allocation1 + $0x10] sm:$0xff pattern:$0x75316420] }
  0x31   : > { %430 = vst [vmem:[#allocation1 + $0x10] ss:$2 sm:$0xff] %v170_v0 }
  0x32   : > { %v342_v9 = vld.sshfl [vmem:[#allocation1] sm:$0xff pattern:$0x75316420]  ;;  %v343_v10 = vld.sshfl [vmem:[#allocation1 + $0x8] sm:$0xff pattern:$0x75316420] }
  0x33   : > { %345 = vrot.lane.b32.xlu1 %v342_v9, %s1239_s30  ;;  %428 = vst [vmem:[#allocation1] ss:$2 sm:$0xff] %v1320_v1  ;;  %347 = vrot.lane.b32.xlu2 %v343_v10, %s1239_s30 }
  0x38   : > { %v433_v11 = vld.sshfl [vmem:[#allocation1 + $0x10] sm:$0xff pattern:$0x75316420] }
  0x39   : > { %519 = vst [vmem:[#allocation1 + $0x10] ss:$2 sm:$0xff] %v170_v0 }
  0x3a   : > { %v432_v12 = vld.sshfl [vmem:[#allocation1 + $0x8] sm:$0xff pattern:$0x75316420]  ;;  %v431_v13 = vld.sshfl [vmem:[#allocation1] sm:$0xff pattern:$0x75316420] }
  0x3b   : > { %438 = vrot.lane.b32.xlu1 %v433_v11, %s1240_s4  ;;  %436 = vrot.lane.b32.xlu0 %v432_v12, %s1240_s4  ;;  %517 = vst [vmem:[#allocation1] ss:$2 sm:$0xff] %v1320_v1 }
  0x3c   : > { %349 = vrot.lane.b32.xlu2 %v344_v8, %s1239_s30  ;;  %s1188_s30 = sshra.s32 %s993_s16, 4  ;;  %s1189_s30 = int_to_ptr.hbm [resolvable:$true] %s1188_s30 }
  0x3d   : > { %p1195_p0 = scmp.lt.s32.totalorder %s1189_s30, %s1467_s3 }
  0x40   : > { %v522_v14 = vld.sshfl [vmem:[#allocation1 + $0x10] sm:$0xff pattern:$0x75316420] }
  0x41   : > { %608 = vst [vmem:[#allocation1 + $0x10] ss:$2 sm:$0xff] %v170_v0 }
  0x42   : > { %v521_v15 = vld.sshfl [vmem:[#allocation1 + $0x8] sm:$0xff pattern:$0x75316420]  ;;  %v520_v16 = vld.sshfl [vmem:[#allocation1] sm:$0xff pattern:$0x75316420] }
  0x43   : > { %527 = vrot.lane.b32.xlu0 %v522_v14, %s1241_s5  ;;  %523 = vrot.lane.b32.xlu1 %v520_v16, %s1241_s5  ;;  %606 = vst [vmem:[#allocation1] ss:$2 sm:$0xff] %v1320_v1 }
  0x44   : > { %434 = vrot.lane.b32.xlu2 %v431_v13, %s1240_s4  ;;  %v1112_v13 = vld [vmem:[%s1465_s1 + $0x40] sm:$0xff]  ;;  %s1190_s4 = scalar_lea.hbm %s1189_s30, 24 }
  0x45   : > { %p1191_p11 = scmp.ne.s32.totalorder %s1189_s30, %s1190_s4 }
  0x47   : > { %p1192_p12 = pnand %p1191_p11, %p1305_p5 }
  0x48   : > { %v611_v17 = vld.sshfl [vmem:[#allocation1 + $0x10] sm:$0xff pattern:$0x75316420] }
  0x49   : > { %697 = vst [vmem:[#allocation1 + $0x10] ss:$2 sm:$0xff] %v170_v0  ;;  %p1193_p13 = pneg %p1192_p12 }
  0x4a   : > { %v610_v18 = vld.sshfl [vmem:[#allocation1 + $0x8] sm:$0xff pattern:$0x75316420]  ;;  %v609_v19 = vld.sshfl [vmem:[#allocation1] sm:$0xff pattern:$0x75316420] }
  0x4b   : > { %614 = vrot.lane.b32.xlu1 %v610_v18, %s1242_s6  ;;  %612 = vrot.lane.b32.xlu0 %v609_v19, %s1242_s6  ;;  %695 = vst [vmem:[#allocation1] ss:$2 sm:$0xff] %v1320_v1 }
  0x4c   : > { %525 = vrot.lane.b32.xlu2 %v521_v15, %s1241_s5 }
  0x50   : > { %v700_v20 = vld.sshfl [vmem:[#allocation1 + $0x10] sm:$0xff pattern:$0x75316420] }
  0x51   : > { %786 = vst [vmem:[#allocation1 + $0x10] ss:$2 sm:$0xff] %v170_v0 }
  0x52   : > { %v699_v21 = vld.sshfl [vmem:[#allocation1 + $0x8] sm:$0xff pattern:$0x75316420]  ;;  %v698_v22 = vld.sshfl [vmem:[#allocation1] sm:$0xff pattern:$0x75316420] }
  0x53   : > { %616 = vrot.lane.b32.xlu1 %v611_v17, %s1242_s6  ;;  %703 = vrot.lane.b32.xlu0 %v699_v21, %s1243_s7  ;;  %784 = vst [vmem:[#allocation1] ss:$2 sm:$0xff] %v1320_v1 }
  0x54   : > { %701 = vrot.lane.b32.xlu2 %v698_v22, %s1243_s7 }
  0x58   : > { %v789_v23 = vld.sshfl [vmem:[#allocation1 + $0x10] sm:$0xff pattern:$0x75316420] }
  0x59   : > { %875 = vst [vmem:[#allocation1 + $0x10] ss:$2 sm:$0xff] %v170_v0 }
  0x5a   : > { %v788_v24 = vld.sshfl [vmem:[#allocation1 + $0x8] sm:$0xff pattern:$0x75316420]  ;;  %v787_v25 = vld.sshfl [vmem:[#allocation1] sm:$0xff pattern:$0x75316420] }
  0x5b   : > { %794 = vrot.lane.b32.xlu1 %v789_v23, %s1244_s8  ;;  %792 = vrot.lane.b32.xlu0 %v788_v24, %s1244_s8  ;;  %873 = vst [vmem:[#allocation1] ss:$2 sm:$0xff] %v1320_v1 }
  0x5c   : > { %705 = vrot.lane.b32.xlu2 %v700_v20, %s1243_s7  ;;  %s1194_s7 = scalar_lea.hbm %s1467_s3, 48 }
  0x5d   : > { %p1196_p1 = scmp.lt.s32.totalorder %s1194_s7, %s1190_s4 }
  0x5f   : > { %p1197_p2 = por %p1196_p1, %p1195_p0 }
  0x60   : > { %v878_v26 = vld.sshfl [vmem:[#allocation1 + $0x10] sm:$0xff pattern:$0x75316420] }
  0x61   : > { %p1198_p3 = pnand %p1197_p2, %p1193_p13 }
  0x62   : > { %v876_v27 = vld.sshfl [vmem:[#allocation1] sm:$0xff pattern:$0x75316420]  ;;  %v877_v28 = vld.sshfl [vmem:[#allocation1 + $0x8] sm:$0xff pattern:$0x75316420] }
  0x63   : > { %883 = vrot.lane.b32.xlu0 %v878_v26, %s1245_s9  ;;  %879 = vrot.lane.b32.xlu1 %v876_v27, %s1245_s9 }
  0x64   : > { %790 = vrot.lane.b32.xlu2 %v787_v25, %s1244_s8 }
  0x6b   : > { %963 = vperm.xlu0 %1173, %v960_v55  }
  0x6c   : > { %881 = vrot.lane.b32.xlu2 %v877_v28, %s1245_s9 }
  0x8d   : > { %v348_v30 = vpop.permute.xlu2 %347 }
  0x93   : > { %v187_v32 = vpop.permute.xlu0 %186 }
  0x94   : > { %v185_v33 = vpop.permute.xlu1 %184  ;;  %1062 = vmatpush.msk.msra.mxu2 %vm195_vm0, %v187_v32 }
  0x95   : > { %v190_v34 = vsel %vm188_vm2, %v185_v33, %v187_v32  ;;  %1063 = vmatmul.msk.f32.vlgmr.msra.gmra.mxu2 %vm191_vm1, %v1057_v31 }
  0x96   : > { %1060 = vmatpush.msk.msra.mxu1 %vm195_vm0, %v190_v34  ;;  %v350_v35 = vpop.permute.xlu2 %349 }
  0x97   : > { %1061 = vmatmul.msk.f32.vlgmr.msra.gmra.mxu1 %vm191_vm1, %v1057_v31  ;;  %v353_v37 = vsel %vm351_vm3, %v348_v30, %v350_v35 }
  0x98   : > { %1073 = vmatpush.msk.msrb.mxu3 %vm195_vm0, %v353_v37  ;;  %1068 = vmatpush.msk.msrb.mxu1 %vm195_vm0, %v1324_v5 }
  0x99   : > { %1074 = vmatmul.msk.f32.vlgmr.msrb.gmra.mxu3 %vm191_vm1, %v1070_v36 }
  0x9b   : > { %v183_v38 = vpop.permute.xlu0 %182 }
  0x9c   : > { %v189_v39 = vsel %vm188_vm2, %v183_v38, %v185_v33 }
  0x9d   : > { %1058 = vmatpush.msk.msra.mxu0 %vm195_vm0, %v189_v39 }
  0x9e   : > { %1059 = vmatmul.msk.f32.vlgmr.msra.gmra.mxu0 %vm191_vm1, %v1057_v31  ;;  %v435_v40 = vpop.permute.xlu2 %434 }
  0x9f   : > { %1066 = vmatpush.msk.msrb.mxu0 %vm195_vm0, %v1328_v7  ;;  %1069 = vmatmul.msk.f32.vlgmr.msrb.gmra.mxu1 %vm191_vm1, %v171_v29  ;;  %v1105_v7 = vld [vmem:[%s1465_s1 + $0x38] sm:$0xff] }
  0xa1   : > { %1075 = vmatpush.msk.msra.mxu0 %vm195_vm0, %v350_v35 }
  0xa5   : > { %v346_v41 = vpop.permute.xlu1 %345 }
  0xa6   : > { %v352_v42 = vsel %vm351_vm3, %v346_v41, %v348_v30  ;;  %1067 = vmatmul.msk.f32.vlgmr.msrb.gmra.mxu0 %vm191_vm1, %v171_v29  ;;  %v526_v43 = vpop.permute.xlu2 %525 }
  0xa7   : > { %1071 = vmatpush.msk.msrb.mxu2 %vm195_vm0, %v352_v42 }
  0xa8   : > { %1072 = vmatmul.msk.f32.vlgmr.msrb.gmra.mxu2 %vm191_vm1, %v1070_v36 }
  0xad   : > { %v439_v44 = vpop.permute.xlu1 %438  ;;  %v437_v45 = vpop.permute.xlu0 %436 }
  0xae   : > { %v442_v47 = vsel %vm440_vm4, %v437_v45, %v439_v44  ;;  %v441_v48 = vsel %vm440_vm4, %v435_v40, %v437_v45  ;;  %1082 = vmatpush.msk.msra.mxu3 %vm195_vm0, %v439_v44  ;;  %1076 = vmatmul.msk.f32.vlgmr.msra.gmra.mxu0 %vm191_vm1, %v1070_v36  ;;  %v702_v49 = vpop.permute.xlu2 %701 }
  0xaf   : > { %1078 = vmatpush.msk.msra.mxu1 %vm195_vm0, %v441_v48  ;;  %1080 = vmatpush.msk.msra.mxu2 %vm195_vm0, %v442_v47  ;;  %v294_v19 = vpop.f32.mrf.mxu3 }
  0xb0   : > { %1081 = vmatmul.msk.f32.vlgmr.msra.gmra.mxu2 %vm191_vm1, %v1077_v46  ;;  %1079 = vmatmul.msk.f32.vlgmr.msra.gmra.mxu1 %vm191_vm1, %v1077_v46 }
  0xb1   : > { %1083 = vmatmul.msk.f32.vlgmr.msra.gmra.mxu3 %vm191_vm1, %v1077_v46 }
  0xb5   : > { %v528_v50 = vpop.permute.xlu0 %527  ;;  %v524_v51 = vpop.permute.xlu1 %523 }
  0xb6   : > { %v531_v53 = vsel %vm529_vm5, %v526_v43, %v528_v50  ;;  %v530_v54 = vsel %vm529_vm5, %v524_v51, %v526_v43  ;;  %1089 = vmatpush.msk.msrb.mxu2 %vm195_vm0, %v528_v50  ;;  %v706_v61 = vpop.permute.xlu2 %705 }
  0xb7   : > { %1085 = vmatpush.msk.msrb.mxu0 %vm195_vm0, %v530_v54  ;;  %1087 = vmatpush.msk.msrb.mxu1 %vm195_vm0, %v531_v53 }
  0xb8   : > { %1090 = vmatmul.msk.f32.vlgmr.msrb.gmra.mxu2 %vm191_vm1, %v1084_v52  ;;  %1086 = vmatmul.msk.f32.vlgmr.msrb.gmra.mxu0 %vm191_vm1, %v1084_v52 }
  0xb9   : > { %1088 = vmatmul.msk.f32.vlgmr.msrb.gmra.mxu1 %vm191_vm1, %v1084_v52 }
  0xbd   : > { %v615_v57 = vpop.permute.xlu1 %614  ;;  %v613_v58 = vpop.permute.xlu0 %612 }
  0xbe   : > { %v619_v60 = vsel %vm618_vm6, %v613_v58, %v615_v57  ;;  %v791_v4 = vpop.permute.xlu2 %790 }
  0xbf   : > { %1092 = vmatpush.msk.msrb.mxu3 %vm195_vm0, %v619_v60 }
  0xc0   : > { %1093 = vmatmul.msk.f32.vlgmr.msrb.gmra.mxu3 %vm191_vm1, %v1091_v59 }
  0xc5   : > { %v617_v62 = vpop.permute.xlu1 %616  ;;  %v704_v63 = vpop.permute.xlu0 %703 }
  0xc6   : > { %v620_v0 = vsel %vm618_vm6, %v615_v57, %v617_v62  ;;  %v708_v1 = vsel %vm707_vm7, %v702_v49, %v704_v63  ;;  %v709_v2 = vsel %vm707_vm7, %v704_v63, %v706_v61  ;;  %1096 = vmatpush.msk.msra.mxu1 %vm195_vm0, %v617_v62  ;;  %v882_v10 = vpop.permute.xlu2 %881 }
  0xc7   : > { %1094 = vmatpush.msk.msra.mxu0 %vm195_vm0, %v620_v0  ;;  %1097 = vmatmul.msk.f32.vlgmr.msra.gmra.mxu1 %vm191_vm1, %v1091_v59 }
  0xc8   : > { %1099 = vmatpush.msk.msra.mxu2 %vm195_vm0, %v708_v1  ;;  %1101 = vmatpush.msk.msra.mxu3 %vm195_vm0, %v709_v2 }
  0xc9   : > { %1095 = vmatmul.msk.f32.vlgmr.msra.gmra.mxu0 %vm191_vm1, %v1091_v59  ;;  %1100 = vmatmul.msk.f32.vlgmr.msra.gmra.mxu2 %vm191_vm1, %v1098_v3 }
  0xca   : > { %1102 = vmatmul.msk.f32.vlgmr.msra.gmra.mxu3 %vm191_vm1, %v1098_v3  ;;  %1103 = vmatpush.msk.msrb.mxu0 %vm195_vm0, %v706_v61 }
  0xcd   : > { %v795_v5 = vpop.permute.xlu1 %794  ;;  %v793_v6 = vpop.permute.xlu0 %792 }
  0xce   : > { %v798_v8 = vsel %vm796_vm8, %v793_v6, %v795_v5  ;;  %v797_v9 = vsel %vm796_vm8, %v791_v4, %v793_v6  ;;  %1110 = vmatpush.msk.msrb.mxu3 %vm195_vm0, %v795_v5 }
  0xcf   : > { %1106 = vmatpush.msk.msrb.mxu1 %vm195_vm0, %v797_v9  ;;  %1108 = vmatpush.msk.msrb.mxu2 %vm195_vm0, %v798_v8 }
  0xd0   : > { %1107 = vmatmul.msk.f32.vlgmr.msrb.gmra.mxu1 %vm191_vm1, %v1105_v7 }
  0xd1   : > { %1104 = vmatmul.msk.f32.vlgmr.msrb.gmra.mxu0 %vm191_vm1, %v1098_v3  ;;  %1109 = vmatmul.msk.f32.vlgmr.msrb.gmra.mxu2 %vm191_vm1, %v1105_v7 }
  0xd2   : > { %1111 = vmatmul.msk.f32.vlgmr.msrb.gmra.mxu3 %vm191_vm1, %v1105_v7 }
  0xd5   : > { %v884_v11 = vpop.permute.xlu0 %883  ;;  %v880_v12 = vpop.permute.xlu1 %879 }
  0xd6   : > { %v887_v14 = vsel %vm885_vm9, %v882_v10, %v884_v11  ;;  %v886_v15 = vsel %vm885_vm9, %v880_v12, %v882_v10  ;;  %1117 = vmatpush.msk.msra.mxu2 %vm195_vm0, %v884_v11 }
  0xd7   : > { %1113 = vmatpush.msk.msra.mxu0 %vm195_vm0, %v886_v15  ;;  %1115 = vmatpush.msk.msra.mxu1 %vm195_vm0, %v887_v14 }
  0xd8   : > { %1116 = vmatmul.msk.f32.vlgmr.msra.gmra.mxu1 %vm191_vm1, %v1112_v13 }
  0xd9   : > { %1114 = vmatmul.msk.f32.vlgmr.msra.gmra.mxu0 %vm191_vm1, %v1112_v13  ;;  %1118 = vmatmul.msk.f32.vlgmr.msra.gmra.mxu2 %vm191_vm1, %v1112_v13 }
  0xdd   : > { %v964_v59 = vpop.permute.xlu0 %963 }
 0x114   : > { %v239_v16 = vpop.f32.mrf.mxu1 }
 0x118   : > { %v259_v18 = vpop.f32.mrf.mxu2 }
 0x11b   : > { %v219_v17 = vpop.f32.mrf.mxu0 }
 0x11c   : > { %v334_v20 = vpop.f32.mrf.mxu1  ;;  %v400_v23 = vpop.f32.mrf.mxu3  ;;  %v295_v30 = vadd.f32 %v294_v19, %v219_v17 }
 0x11d   : > { %v335_v41 = vadd.f32 %v334_v20, %v259_v18 }
 0x123   : > { %v314_v21 = vpop.f32.mrf.mxu0 }
 0x124   : > { %v315_v34 = vadd.f32 %v314_v21, %v239_v16 }
 0x126   : > { %v424_v37 = vadd.f32 %v400_v23, %v315_v34 }
 0x12b   : > { %v380_v22 = vpop.f32.mrf.mxu2  ;;  %v420_v25 = vpop.f32.mrf.mxu0 }
 0x12c   : > { %v423_v36 = vadd.f32 %v380_v22, %v295_v30  ;;  %v425_v48 = vadd.f32 %v420_v25, %v335_v41 }
 0x12d   : > { %v469_v24 = vpop.f32.mrf.mxu1 }
 0x12e   : > { %v512_v38 = vadd.f32 %v469_v24, %v423_v36 }
 0x133   : > { %v489_v26 = vpop.f32.mrf.mxu2 }
 0x134   : > { %v509_v27 = vpop.f32.mrf.mxu3  ;;  %v513_v39 = vadd.f32 %v489_v26, %v424_v37 }
 0x135   : > { %v558_v29 = vpop.f32.mrf.mxu0  ;;  %v514_v51 = vadd.f32 %v509_v27, %v425_v48 }
 0x136   : > { %v578_v28 = vpop.f32.mrf.mxu1  ;;  %v601_v42 = vadd.f32 %v558_v29, %v512_v38 }
 0x137   : > { %v602_v46 = vadd.f32 %v578_v28, %v513_v39 }
 0x13b   : > { %v598_v31 = vpop.f32.mrf.mxu2 }
 0x13c   : > { %v603_v54 = vadd.f32 %v598_v31, %v514_v51 }
 0x143   : > { %v647_v32 = vpop.f32.mrf.mxu3 }
 0x144   : > { %v687_v33 = vpop.f32.mrf.mxu1  ;;  %v690_v47 = vadd.f32 %v647_v32, %v601_v42 }
 0x145   : > { %v692_v60 = vadd.f32 %v687_v33, %v603_v54 }
 0x146   : > { %v667_v35 = vpop.f32.mrf.mxu0 }
 0x147   : > { %v691_v49 = vadd.f32 %v667_v35, %v602_v46 }
 0x14c   : > { %v736_v40 = vpop.f32.mrf.mxu2 }
 0x14d   : > { %v825_v43 = vpop.f32.mrf.mxu1  ;;  %v756_v44 = vpop.f32.mrf.mxu3  ;;  %v779_v50 = vadd.f32 %v736_v40, %v690_v47 }
 0x14e   : > { %v776_v45 = vpop.f32.mrf.mxu0  ;;  %v780_v52 = vadd.f32 %v756_v44, %v691_v49 }
 0x14f   : > { %v868_v55 = vadd.f32 %v825_v43, %v779_v50  ;;  %v781_v0 = vadd.f32 %v776_v45, %v692_v60 }
 0x154   : > { %v845_v53 = vpop.f32.mrf.mxu2 }
 0x155   : > { %v869_v56 = vadd.f32 %v845_v53, %v780_v52  ;;  %v934_v57 = vpop.f32.mrf.mxu1  ;;  %v865_v63 = vpop.f32.mrf.mxu3 }
 0x156   : > { %v914_v58 = vpop.f32.mrf.mxu0  ;;  %v870_v3 = vadd.f32 %v865_v63, %v781_v0 }
 0x157   : > { %v957_v61 = vadd.f32 %v914_v58, %v868_v55  ;;  %v958_v62 = vadd.f32 %v934_v57, %v869_v56 }
 0x159   : > { %v966_v1 = vadd.f32 %v964_v59, %v957_v61  ;;  %v967_v2 = vadd.f32 %v964_v59, %v958_v62 }
 0x15b   : > { %v969_v4 = vmax.f32 %v966_v1, 0.0  ;;  %v970_v5 = vmax.f32 %v967_v2, 0.0 }
 0x15c   : > { %v954_v6 = vpop.f32.mrf.mxu2 }
 0x15d   : > { %972 = vst [vmem:[%s163_s27] sm:$0xff] %v969_v4  ;;  %v959_v7 = vadd.f32 %v954_v6, %v870_v3 }
 0x15e   : > { %973 = vst [vmem:[%s163_s27 + $0x8] sm:$0xff] %v970_v5 }
 0x15f   : > { %v968_v8 = vadd.f32 %v964_v59, %v959_v7 }
 0x161   : > { %v971_v9 = vmax.f32 %v968_v8, 0.0 }
 0x163   : > { %975 = vst.msk [vmem:[%s163_s27 + $0x10] sm:$0xff] %vm974_vm10, %v971_v9 }
 0x164   : > { %1201 = shalt.err (!%p1198_p3)
}
 0x165   : > { %1125 = dma.vmem_to_hbm [thread:$0]  (%p1305_p5), %s991_s28, 384, %s993_s16, %s977_s29  }
 0x166 PF: > { %p1131_p4 = scmp.ge.s32.totalorder %s1236_s15, 2  ;;  %s1004_s10 = sand.u32 1, %s1224_s12  }
 0x167   : > { %s1005_s11 = scalar_lea.sflag [#allocation3], %s1004_s10 }
 0x168   : > { %p1128_p7 = pnand %p1131_p4, %p1309_p6 }
 0x16a   : > { %p1129_p8 = pneg %p1128_p7 }
 0x16c   : > { %1219 = dma.done.wait (%p1129_p8), %s1005_s11, 384  }
 0x16d   : > { %1221 = vsyncadd (%p1129_p8), %s1005_s11, 4294966912  ;;  %p13_p9 = scmp.ge.s32.totalorder %s1292_s18, 4   ;;  %s1470_s12 = smov %s1228_s13 }
 0x16e   : > { %s1471_s13 = smov %s1232_s14  ;;  %s1472_s14 = smov %s1303_s21 }
 0x16f   : > { %s1473_s15 = smov %s1292_s18  ;;  %15 = sbr.rel (!%p13_p9) target bundleno = 3 (0x3), region = 84 }
 0x174   :  { %1011 = vsyncpa [#allocation3], 1 }
 0x175   :  { %1013 = vsyncpa [#allocation3 + $0x1], 1 }

</bundles_post_ra>
